<compile_context>
chip_gen: v5e
topology: v5e:2x2
jax: 0.10.0
libtpu: 0.0.40
codegen_flags: <defaults>
</compile_context>

<pallas_src>
import jax
import jax.numpy as jnp
from jax.experimental import pallas as pl
from jax.experimental.pallas import tpu as pltpu

INVSOFTPLUS = 1.4427


def _mgm_kernel(u_ref, s_ref, bias_ref, x_ref, o_ref):
    # u_ref:    (C*C,)          SMEM  sqrt(0.5)-scaled lower-triangular matrix (flat)
    # s_ref:    (C,)            SMEM  mat @ shift  (shift = -mu fwd, +mu rev)
    # bias_ref: (C,)            SMEM  logW + logD
    # x_ref:    (C, S, 128)     VMEM  input tile (one batch's channels)
    # o_ref:    (C, S, 128)     VMEM  output tile
    C = x_ref.shape[0]
    for c in range(C):
        # Unrolled VPU broadcast-FMA contraction over the lower triangle.
        acc = x_ref[0].astype(jnp.float32) * u_ref[c * C + 0] + s_ref[c]
        for j in range(1, c + 1):
            acc = acc + x_ref[j].astype(jnp.float32) * u_ref[c * C + j]
        # 0.5 factor already folded into u (scaled by sqrt(0.5) in the wrapper).
        o_ref[c] = (bias_ref[c] - acc * acc).astype(o_ref.dtype)


def _round_up(n, m):
    return ((n + m - 1) // m) * m


def mgm_log_prob(x, w, mu, U_entries, rev=False):
    """JAX/Pallas equivalent of MultivariateGaussianMixture.forward."""
    B, C, H, W = x.shape
    lanes = 128
    in_dtype = x.dtype
    itemsize = jnp.dtype(in_dtype).itemsize

    # ---------------- parameter glue (tiny, plain JAX) ----------------
    logW = -jax.nn.softplus(w.reshape(C).astype(jnp.float32))               # (C,)
    U_diag_raw = U_entries[:C].astype(jnp.float32)
    D = INVSOFTPLUS * jax.nn.softplus(U_diag_raw)                            # (C,)
    # log(D) with underflow protection: log(softplus(u)) ~= u for u << 0.
    safe_u = jnp.where(U_diag_raw < -30.0, 0.0, U_diag_raw)
    logD = jnp.log(INVSOFTPLUS) + jnp.where(
        U_diag_raw < -30.0, U_diag_raw, jnp.log(jax.nn.softplus(safe_u)))
    T = U_entries[C:].astype(jnp.float32)
    ri, ci = jnp.tril_indices(C, k=-1)
    U_mat = jnp.diag(D).at[ri, ci].set(T)                                    # (C, C)

    if rev:
        logD = -logD
        # Triangular inverse via solve (exact zeros above diag, stable).
        mat = jax.scipy.linalg.solve_triangular(
            U_mat, jnp.eye(C, dtype=U_mat.dtype), lower=True)
        shift = mu.reshape(C).astype(jnp.float32)                            # x + mu
    else:
        mat = U_mat
        shift = -mu.reshape(C).astype(jnp.float32)                           # x - mu

    mat = mat * (0.5 ** 0.5)                       # fold the 0.5 of -0.5*y^2
    s_vec = mat @ shift                            # fold mean shift: (C,)
    bias = logW + logD                             # (C,)
    mat_flat = mat.reshape(C * C)                  # 1-D SMEM layout (no 2-D pad)

    # -------- layout: (B, C, H, W) -> (B*C, rows, 128), no transposes --------
    HW = H * W
    rows = pl.cdiv(HW, lanes)
    x2 = x.reshape(B * C, HW)                      # free, contiguous reshape
    padded_cols = rows * lanes
    if padded_cols != HW:
        # Only when HW isn't lane-aligned do we pay a pad (needed for reshape).
        x2 = jnp.pad(x2, ((0, 0), (0, padded_cols - HW)))
    x3 = x2.reshape(B * C, rows, lanes)

    # -------- per-chip VMEM budget & balanced, sublane-aligned tiles --------
    try:
        vmem_cap = int(pltpu.get_tpu_info().vmem_capacity_bytes)
    except Exception:
        vmem_cap = 64 * 1024 * 1024                # conservative (v7x) fallback
    vmem_budget = max(16 << 20, (vmem_cap // 2) - (4 << 20))
    vmem_limit = int(min(vmem_cap - (8 << 20), vmem_budget + (16 << 20)))

    # (2 input + 2 output) double-buffered pipeline bytes per row of the tile.
    bytes_per_row = 2 * C * lanes * (itemsize + itemsize)
    max_rows = max(8, (vmem_budget // bytes_per_row) // 8 * 8)

    n_tiles = pl.cdiv(rows, max_rows)
    tile_rows = _round_up(pl.cdiv(rows, n_tiles), 8)
    # Megacore fan-out (v7x): make sure the parallel grid has >= 2 steps.
    if B == 1 and pl.cdiv(rows, tile_rows) < 2 and rows > 8:
        tile_rows = _round_up(pl.cdiv(rows, 2), 8)
    # Never exceed the full row extent (full-dim blocks are always legal).
    tile_rows = min(tile_rows, rows)
    n_row_tiles = pl.cdiv(rows, tile_rows)         # ragged tail handled by Pallas

    grid = (B, n_row_tiles)

    out = pl.pallas_call(
        _mgm_kernel,
        out_shape=jax.ShapeDtypeStruct((B * C, rows, lanes), in_dtype),
        grid_spec=pltpu.PrefetchScalarGridSpec(
            num_scalar_prefetch=3,                 # mat_flat, s_vec, bias -> SMEM
            grid=grid,
            in_specs=[
                pl.BlockSpec((C, tile_rows, lanes),
                             lambda b, i, u, s, bb: (b, i, 0)),
            ],
            out_specs=pl.BlockSpec((C, tile_rows, lanes),
                                   lambda b, i, u, s, bb: (b, i, 0)),
        ),
        compiler_params=pltpu.CompilerParams(
            dimension_semantics=("parallel", "parallel"),
            vmem_limit_bytes=vmem_limit,
        ),
    )(mat_flat, s_vec, bias, x3)

    out = out.reshape(B * C, padded_cols)
    if padded_cols != HW:
        out = out[:, :HW]
    return out.reshape(B, C, H, W)


def _ref_log_prob(x, w, mu, U_entries, rev=False):
    """Pure-JAX reference mirroring the PyTorch module exactly."""
    B, C, H, W = x.shape
    logW = -jax.nn.softplus(w)
    D = INVSOFTPLUS * jax.nn.softplus(U_entries[:C])
    logD = jnp.log(D)[:, None]
    T = U_entries[C:]
    ri, ci = jnp.tril_indices(C, k=-1)
    U_mat = jnp.diag(D).at[ri, ci].set(T)
    xf = jnp.transpose(x, (1, 0, 2, 3)).reshape(C, -1)
    if rev:
        logD = -logD
        logP = -0.5 * (jnp.linalg.inv(U_mat) @ (xf + mu)) ** 2
    else:
        logP = -0.5 * (U_mat @ (xf - mu)) ** 2
    log_probs = logW + logD + logP
    return jnp.transpose(log_probs.reshape(C, B, H, W), (1, 0, 2, 3))


if __name__ == "__main__":
    B, C, H, W = 2, 4, 16, 16

    key = jax.random.PRNGKey(0)
    kx, kw, kmu, ku = jax.random.split(key, 4)

    x = jax.random.normal(kx, (B, C, H, W), dtype=jnp.float32)
    w = 0.1 * jax.random.normal(kw, (C, 1), dtype=jnp.float32)
    mu = 0.1 * jax.random.normal(kmu, (C, 1), dtype=jnp.float32)
    U_entries = 0.1 * jax.random.normal(ku, (C * (C + 1) // 2,), dtype=jnp.float32)

    for rev in (False, True):
        out = jax.block_until_ready(mgm_log_prob(x, w, mu, U_entries, rev=rev))
        ref = _ref_log_prob(x, w, mu, U_entries, rev=rev)
        assert out.shape == (B, C, H, W)
        assert jnp.allclose(out, ref, atol=1e-5, rtol=1e-5), f"mismatch vs reference (rev={rev})"

    print("KERNEL_OK")
</pallas_src>

<mosaic_0001>
module attributes {stable_mosaic.version = 11 : i64} {
  func.func @_mgm_kernel(%arg0: i32, %arg1: i32, %arg2: memref<16xf32, #tpu.memory_space<smem>>, %arg3: memref<4xf32, #tpu.memory_space<smem>>, %arg4: memref<4xf32, #tpu.memory_space<smem>>, %arg5: memref<4x2x128xf32, #tpu.memory_space<vmem>>, %arg6: memref<4x2x128xf32, #tpu.memory_space<vmem>>) attributes {dimension_semantics = [#tpu.dimension_semantics<parallel>, #tpu.dimension_semantics<parallel>], iteration_bounds = array<i64: 2, 1>, scalar_prefetch = 3 : i64, scratch_operands = 0 : i64, tpu.core_type = #tpu.core_type<tc>, window_params = [{transform_indices = @transform_0, window_bounds = array<i64: 4, 2, 128>}, {transform_indices = @transform_1, window_bounds = array<i64: 4, 2, 128>}]} {
    %c0 = arith.constant 0 : index
    %c0_0 = arith.constant 0 : index
    %c0_1 = arith.constant 0 : index
    %0 = vector.load %arg5[%c0, %c0_0, %c0_1] : memref<4x2x128xf32, #tpu.memory_space<vmem>>, vector<1x2x128xf32>
    %1 = vector.shape_cast %0 : vector<1x2x128xf32> to vector<2x128xf32>
    %c0_2 = arith.constant 0 : index
    %2 = memref.load %arg2[%c0_2] : memref<16xf32, #tpu.memory_space<smem>>
    %3 = vector.broadcast %2 : f32 to vector<2x128xf32>
    %4 = arith.mulf %1, %3 : vector<2x128xf32>
    %c0_3 = arith.constant 0 : index
    %5 = memref.load %arg3[%c0_3] : memref<4xf32, #tpu.memory_space<smem>>
    %6 = vector.broadcast %5 : f32 to vector<2x128xf32>
    %7 = arith.addf %4, %6 : vector<2x128xf32>
    %c0_4 = arith.constant 0 : index
    %8 = memref.load %arg4[%c0_4] : memref<4xf32, #tpu.memory_space<smem>>
    %9 = arith.mulf %7, %7 : vector<2x128xf32>
    %10 = vector.broadcast %8 : f32 to vector<2x128xf32>
    %11 = arith.subf %10, %9 : vector<2x128xf32>
    %c0_5 = arith.constant 0 : index
    %c0_6 = arith.constant 0 : index
    %c0_7 = arith.constant 0 : index
    %12 = vector.load %arg6[%c0_5, %c0_6, %c0_7] : memref<4x2x128xf32, #tpu.memory_space<vmem>>, vector<1x2x128xf32>
    %13 = vector.shape_cast %12 : vector<1x2x128xf32> to vector<2x128xf32>
    %14 = vector.shape_cast %11 : vector<2x128xf32> to vector<1x2x128xf32>
    tpu.vector_store %arg6[%c0_5, %c0_6, %c0_7], %14 {strides = array<i32>} : memref<4x2x128xf32, #tpu.memory_space<vmem>>, vector<1x2x128xf32>,
    %c0_8 = arith.constant 0 : index
    %c0_9 = arith.constant 0 : index
    %c0_10 = arith.constant 0 : index
    %15 = vector.load %arg5[%c0_8, %c0_9, %c0_10] : memref<4x2x128xf32, #tpu.memory_space<vmem>>, vector<1x2x128xf32>
    %16 = vector.shape_cast %15 : vector<1x2x128xf32> to vector<2x128xf32>
    %c4 = arith.constant 4 : index
    %17 = memref.load %arg2[%c4] : memref<16xf32, #tpu.memory_space<smem>>
    %18 = vector.broadcast %17 : f32 to vector<2x128xf32>
    %19 = arith.mulf %16, %18 : vector<2x128xf32>
    %c1 = arith.constant 1 : index
    %20 = memref.load %arg3[%c1] : memref<4xf32, #tpu.memory_space<smem>>
    %21 = vector.broadcast %20 : f32 to vector<2x128xf32>
    %22 = arith.addf %19, %21 : vector<2x128xf32>
    %c1_11 = arith.constant 1 : index
    %c0_12 = arith.constant 0 : index
    %c0_13 = arith.constant 0 : index
    %23 = vector.load %arg5[%c1_11, %c0_12, %c0_13] : memref<4x2x128xf32, #tpu.memory_space<vmem>>, vector<1x2x128xf32>
    %24 = vector.shape_cast %23 : vector<1x2x128xf32> to vector<2x128xf32>
    %c5 = arith.constant 5 : index
    %25 = memref.load %arg2[%c5] : memref<16xf32, #tpu.memory_space<smem>>
    %26 = vector.broadcast %25 : f32 to vector<2x128xf32>
    %27 = arith.mulf %24, %26 : vector<2x128xf32>
    %28 = arith.addf %22, %27 : vector<2x128xf32>
    %c1_14 = arith.constant 1 : index
    %29 = memref.load %arg4[%c1_14] : memref<4xf32, #tpu.memory_space<smem>>
    %30 = arith.mulf %28, %28 : vector<2x128xf32>
    %31 = vector.broadcast %29 : f32 to vector<2x128xf32>
    %32 = arith.subf %31, %30 : vector<2x128xf32>
    %c1_15 = arith.constant 1 : index
    %c0_16 = arith.constant 0 : index
    %c0_17 = arith.constant 0 : index
    %33 = vector.load %arg6[%c1_15, %c0_16, %c0_17] : memref<4x2x128xf32, #tpu.memory_space<vmem>>, vector<1x2x128xf32>
    %34 = vector.shape_cast %33 : vector<1x2x128xf32> to vector<2x128xf32>
    %35 = vector.shape_cast %32 : vector<2x128xf32> to vector<1x2x128xf32>
    tpu.vector_store %arg6[%c1_15, %c0_16, %c0_17], %35 {strides = array<i32>} : memref<4x2x128xf32, #tpu.memory_space<vmem>>, vector<1x2x128xf32>,
    %c0_18 = arith.constant 0 : index
    %c0_19 = arith.constant 0 : index
    %c0_20 = arith.constant 0 : index
    %36 = vector.load %arg5[%c0_18, %c0_19, %c0_20] : memref<4x2x128xf32, #tpu.memory_space<vmem>>, vector<1x2x128xf32>
    %37 = vector.shape_cast %36 : vector<1x2x128xf32> to vector<2x128xf32>
    %c8 = arith.constant 8 : index
    %38 = memref.load %arg2[%c8] : memref<16xf32, #tpu.memory_space<smem>>
    %39 = vector.broadcast %38 : f32 to vector<2x128xf32>
    %40 = arith.mulf %37, %39 : vector<2x128xf32>
    %c2 = arith.constant 2 : index
    %41 = memref.load %arg3[%c2] : memref<4xf32, #tpu.memory_space<smem>>
    %42 = vector.broadcast %41 : f32 to vector<2x128xf32>
    %43 = arith.addf %40, %42 : vector<2x128xf32>
    %c1_21 = arith.constant 1 : index
    %c0_22 = arith.constant 0 : index
    %c0_23 = arith.constant 0 : index
    %44 = vector.load %arg5[%c1_21, %c0_22, %c0_23] : memref<4x2x128xf32, #tpu.memory_space<vmem>>, vector<1x2x128xf32>
    %45 = vector.shape_cast %44 : vector<1x2x128xf32> to vector<2x128xf32>
    %c9 = arith.constant 9 : index
    %46 = memref.load %arg2[%c9] : memref<16xf32, #tpu.memory_space<smem>>
    %47 = vector.broadcast %46 : f32 to vector<2x128xf32>
    %48 = arith.mulf %45, %47 : vector<2x128xf32>
    %49 = arith.addf %43, %48 : vector<2x128xf32>
    %c2_24 = arith.constant 2 : index
    %c0_25 = arith.constant 0 : index
    %c0_26 = arith.constant 0 : index
    %50 = vector.load %arg5[%c2_24, %c0_25, %c0_26] : memref<4x2x128xf32, #tpu.memory_space<vmem>>, vector<1x2x128xf32>
    %51 = vector.shape_cast %50 : vector<1x2x128xf32> to vector<2x128xf32>
    %c10 = arith.constant 10 : index
    %52 = memref.load %arg2[%c10] : memref<16xf32, #tpu.memory_space<smem>>
    %53 = vector.broadcast %52 : f32 to vector<2x128xf32>
    %54 = arith.mulf %51, %53 : vector<2x128xf32>
    %55 = arith.addf %49, %54 : vector<2x128xf32>
    %c2_27 = arith.constant 2 : index
    %56 = memref.load %arg4[%c2_27] : memref<4xf32, #tpu.memory_space<smem>>
    %57 = arith.mulf %55, %55 : vector<2x128xf32>
    %58 = vector.broadcast %56 : f32 to vector<2x128xf32>
    %59 = arith.subf %58, %57 : vector<2x128xf32>
    %c2_28 = arith.constant 2 : index
    %c0_29 = arith.constant 0 : index
    %c0_30 = arith.constant 0 : index
    %60 = vector.load %arg6[%c2_28, %c0_29, %c0_30] : memref<4x2x128xf32, #tpu.memory_space<vmem>>, vector<1x2x128xf32>
    %61 = vector.shape_cast %60 : vector<1x2x128xf32> to vector<2x128xf32>
    %62 = vector.shape_cast %59 : vector<2x128xf32> to vector<1x2x128xf32>
    tpu.vector_store %arg6[%c2_28, %c0_29, %c0_30], %62 {strides = array<i32>} : memref<4x2x128xf32, #tpu.memory_space<vmem>>, vector<1x2x128xf32>,
    %c0_31 = arith.constant 0 : index
    %c0_32 = arith.constant 0 : index
    %c0_33 = arith.constant 0 : index
    %63 = vector.load %arg5[%c0_31, %c0_32, %c0_33] : memref<4x2x128xf32, #tpu.memory_space<vmem>>, vector<1x2x128xf32>
    %64 = vector.shape_cast %63 : vector<1x2x128xf32> to vector<2x128xf32>
    %c12 = arith.constant 12 : index
    %65 = memref.load %arg2[%c12] : memref<16xf32, #tpu.memory_space<smem>>
    %66 = vector.broadcast %65 : f32 to vector<2x128xf32>
    %67 = arith.mulf %64, %66 : vector<2x128xf32>
    %c3 = arith.constant 3 : index
    %68 = memref.load %arg3[%c3] : memref<4xf32, #tpu.memory_space<smem>>
    %69 = vector.broadcast %68 : f32 to vector<2x128xf32>
    %70 = arith.addf %67, %69 : vector<2x128xf32>
    %c1_34 = arith.constant 1 : index
    %c0_35 = arith.constant 0 : index
    %c0_36 = arith.constant 0 : index
    %71 = vector.load %arg5[%c1_34, %c0_35, %c0_36] : memref<4x2x128xf32, #tpu.memory_space<vmem>>, vector<1x2x128xf32>
    %72 = vector.shape_cast %71 : vector<1x2x128xf32> to vector<2x128xf32>
    %c13 = arith.constant 13 : index
    %73 = memref.load %arg2[%c13] : memref<16xf32, #tpu.memory_space<smem>>
    %74 = vector.broadcast %73 : f32 to vector<2x128xf32>
    %75 = arith.mulf %72, %74 : vector<2x128xf32>
    %76 = arith.addf %70, %75 : vector<2x128xf32>
    %c2_37 = arith.constant 2 : index
    %c0_38 = arith.constant 0 : index
    %c0_39 = arith.constant 0 : index
    %77 = vector.load %arg5[%c2_37, %c0_38, %c0_39] : memref<4x2x128xf32, #tpu.memory_space<vmem>>, vector<1x2x128xf32>
    %78 = vector.shape_cast %77 : vector<1x2x128xf32> to vector<2x128xf32>
    %c14 = arith.constant 14 : index
    %79 = memref.load %arg2[%c14] : memref<16xf32, #tpu.memory_space<smem>>
    %80 = vector.broadcast %79 : f32 to vector<2x128xf32>
    %81 = arith.mulf %78, %80 : vector<2x128xf32>
    %82 = arith.addf %76, %81 : vector<2x128xf32>
    %c3_40 = arith.constant 3 : index
    %c0_41 = arith.constant 0 : index
    %c0_42 = arith.constant 0 : index
    %83 = vector.load %arg5[%c3_40, %c0_41, %c0_42] : memref<4x2x128xf32, #tpu.memory_space<vmem>>, vector<1x2x128xf32>
    %84 = vector.shape_cast %83 : vector<1x2x128xf32> to vector<2x128xf32>
    %c15 = arith.constant 15 : index
    %85 = memref.load %arg2[%c15] : memref<16xf32, #tpu.memory_space<smem>>
    %86 = vector.broadcast %85 : f32 to vector<2x128xf32>
    %87 = arith.mulf %84, %86 : vector<2x128xf32>
    %88 = arith.addf %82, %87 : vector<2x128xf32>
    %c3_43 = arith.constant 3 : index
    %89 = memref.load %arg4[%c3_43] : memref<4xf32, #tpu.memory_space<smem>>
    %90 = arith.mulf %88, %88 : vector<2x128xf32>
    %91 = vector.broadcast %89 : f32 to vector<2x128xf32>
    %92 = arith.subf %91, %90 : vector<2x128xf32>
    %c3_44 = arith.constant 3 : index
    %c0_45 = arith.constant 0 : index
    %c0_46 = arith.constant 0 : index
    %93 = vector.load %arg6[%c3_44, %c0_45, %c0_46] : memref<4x2x128xf32, #tpu.memory_space<vmem>>, vector<1x2x128xf32>
    %94 = vector.shape_cast %93 : vector<1x2x128xf32> to vector<2x128xf32>
    %95 = vector.shape_cast %92 : vector<2x128xf32> to vector<1x2x128xf32>
    tpu.vector_store %arg6[%c3_44, %c0_45, %c0_46], %95 {strides = array<i32>} : memref<4x2x128xf32, #tpu.memory_space<vmem>>, vector<1x2x128xf32>,
    return
  }
  func.func @transform_0(%arg0: i32, %arg1: i32, %arg2: memref<16xf32, #tpu.memory_space<smem>>, %arg3: memref<4xf32, #tpu.memory_space<smem>>, %arg4: memref<4xf32, #tpu.memory_space<smem>>) -> (i32, i32, i32) {
    %c0_i32 = arith.constant 0 : i32
    %c0_i32_0 = arith.constant 0 : i32
    return %arg0, %arg1, %c0_i32 : i32, i32, i32
  }
  func.func @transform_1(%arg0: i32, %arg1: i32, %arg2: memref<16xf32, #tpu.memory_space<smem>>, %arg3: memref<4xf32, #tpu.memory_space<smem>>, %arg4: memref<4xf32, #tpu.memory_space<smem>>) -> (i32, i32, i32) {
    %c0_i32 = arith.constant 0 : i32
    %c0_i32_0 = arith.constant 0 : i32
    return %arg0, %arg1, %c0_i32 : i32, i32, i32
  }
}

</mosaic_0001>

<bundles_post_ra>
// kernel: tpu_custom_call.1
= control target key start
LH: loop header
LB: loop body
LE: loop exit
PB: predicated region body
PF: predicated region fallthrough
CT: control target
= control target key end

     0   :  { %s625_s21 = smov [#allocation3]   ;;  %s626_s22 = smov [#allocation4]   ;;  %s818_s0 = inlined_call_operand.hbm [shape: f32[16], index: 0, kind: input, shape index: {}]   ;;  %s819_s3 = inlined_call_operand.hbm [shape: f32[8,2,128], index: 3, kind: input, shape index: {}]   ;;  %s820_s4 = inlined_call_operand.hbm [shape: f32[8,2,128], index: 4, kind: output, shape index: {}]   ;;  %s821_s1 = inlined_call_operand.hbm [shape: f32[4], index: 1, kind: input, shape index: {}]   ;;  %s822_s2 = inlined_call_operand.vmem [shape: f32[4], index: 2, kind: input, shape index: {}]  }
   0x1   :  { %s10_s17 = sshll.u32 %s818_s0, 4  ;;  %s15_s20 = sshll.u32 %s821_s1, 4  ;;  %s11_s17 = int_to_ptr.hbm [resolvable:$true] %s10_s17  ;;  %s16_s20 = int_to_ptr.hbm [resolvable:$true] %s15_s20 }
   0x2   :  { %13 = dma.hbm_to_smem %s11_s17, 16, %s625_s21, [#allocation2] }
   0x3   :  { %18 = dma.hbm_to_smem %s16_s20, 16, %s626_s22, [#allocation2] }
   0x4   :  { %s20_s25 = sshll.u32 %s822_s2, 4  ;;  %s627_s26 = smov [#allocation5]   ;;  %s21_s25 = int_to_ptr.vmem [resolvable:$true] %s20_s25 }
   0x5   :  { %23 = dma.vmem_to_smem %s21_s25, 16, %s627_s26, [#allocation2] }
   0x6   :  { %591 = dma.done.wait [#allocation2], 48 }
   0x7   :  { %592 = vsyncadd [#allocation2], 4294967248 }
   0x8   :  { %26 = sfence }
   0x9   :  { %27 = vsyncpa [#allocation7], 0 }
   0xa   :  { %29 = vsyncpa [#allocation7 + $0x1], 0 }
   0xb   :  { %30 = vsyncpa [#allocation8], 0 }
   0xc   :  { %32 = vsyncpa [#allocation8 + $0x1], 0  ;;  %s666_s0 = smov 0   ;;  %s668_s1 = smov 0  }
   0xd   :  { %s670_s27 = smov 0   ;;  %s672_s28 = smov 0  }
   0xe   :  { %s674_s29 = smov 0   ;;  %s676_s2 = smov 0  }
   0xf LB: > { %s363_s30 = sadd.s32 4294967295, %s623_s2   ;;  %s364_s5 = sadd.s32 4294967294, %s623_s2   ;;  %s623_s2 = sphi %s676_s2, %s38_s2   ;;  %s619_s29 = sphi %s674_s29, %s831_s29   ;;  %s615_s28 = sphi %s672_s28, %s830_s28   ;;  %s611_s27 = sphi %s670_s27, %s829_s27   ;;  %s607_s1 = sphi %s668_s1, %s828_s1   ;;  %s603_s0 = sphi %s666_s0, %s827_s0  }
  0x10   : > { %s50_s6 = sadd.s32 1, %s619_s29  ;;  %s59_s7 = sadd.s32 1, %s611_s27 }
  0x11   : > { %p52_p0 = scmp.ge.s32.totalorder %s50_s6, 2  ;;  %p66_p1 = scmp.ne.s32.totalorder %s611_s27, %s607_s1 }
  0x12   : > { %p67_p2 = scmp.eq.s32.totalorder %s623_s2, 0  ;;  %p72_p3 = scmp.ne.s32.totalorder %s607_s1, %s603_s0 }
  0x13   : > { %s833_s6 = smov (%p52_p0, %s50_s6), 0  ;;  %p73_p5 = scmp.eq.s32.totalorder %s363_s30, 0 }
  0x14   : > { %p707_p4 = por %p67_p2, %p66_p1  ;;  %s54_s9 = ssub.s32 %s619_s29, %s833_s6 }
  0x15   : > { %p98_p6 = scmp.eq.s32.totalorder %s363_s30, 1  ;;  %p57_p7 = scmp.eq.s32.totalorder %s54_s9, 0 }
  0x16   : > { %p713_p8 = por %p73_p5, %p72_p3  ;;  %p104_p10 = scmp.eq.s32.totalorder %s364_s5, 1 }
  0x17   : > { %p717_p9 = por %p98_p6, %p66_p1  ;;  %p366_p12 = scmp.ge.s32.totalorder %s623_s2, 2 }
  0x18   : > { %s722_s12 = scalar_select %p57_p7, %s611_s27, %s59_s7  }
  0x19   : > { %p724_p11 = por %p104_p10, %p72_p3  ;;  %p416_p13 = scmp.lt.s32.totalorder %s623_s2, 2 }
  0x1a   : > { %s124_s14 = sand.u32 1, %s611_s27   ;;  %s402_s16 = sshll.u32 %s619_s29, 3 }
  0x1b   : > { %s367_s15 = sshll.u32 %s124_s14, 3  ;;  %s134_s19 = scalar_lea.hbm %s819_s3, %s402_s16 }
  0x1c   : > { %s128_s20 = scalar_lea.vmem [#allocation6], %s367_s15  ;;  %s135_s22 = sshll.u32 %s134_s19, 4  ;;  %s136_s22 = int_to_ptr.hbm [resolvable:$true] %s135_s22 }
  0x1d   : > { %s137_s21 = sshll.u32 %s128_s20, 4  ;;  %p409_p0 = pnand %p416_p13, %p707_p4  ;;  %s138_s21 = int_to_ptr.vmem [resolvable:$true] %s137_s21 }
  0x1e   : > { %p370_p1 = scmp.ge.s32.totalorder %s623_s2, 1  ;;  %s125_s23 = scalar_lea.sflag [#allocation7], %s124_s14 }
  0x1f   : > { %s628_s24 = smov 32   ;;  %s629_s25 = smov 2  }
  0x20   : > { %411 = dma.hbm_to_vmem [thread:$0]  (!%p409_p0), %s136_s22, 128, %s138_s21, %s125_s23, %s628_s24, %s628_s24, %s629_s25  }
  0x21   : > { %p145_p2 = scmp.lt.s32.totalorder %s623_s2, 3 }
  0x23   : > { %p146_p3 = pnand %p370_p1, %p145_p2 }
  0x24   : > { %s740_s26 = sand.u32 (!%p146_p3), 1, %s607_s1  }
  0x25   : > { %149 = sbr.rel (%p146_p3) target bundleno = 80 (0x50), region = 24  ;;  %s371_s30 = sshll.u32 (!%p146_p3), %s740_s26, 3 }
  0x26   : > { %s152_s5 = scalar_lea.sflag (!%p146_p3), [#allocation7], %s740_s26  ;;  %s746_s7 = scalar_lea.vmem (!%p146_p3), [#allocation6], %s371_s30 }
  0x2a   : > { %594 = dma.done.wait (%p713_p8), %s152_s5, 128  }
  0x2b   : > { %596 = vsyncadd (%p713_p8), %s152_s5, 4294967168  ;;  %s178_s8 = sld [smem:[#allocation3]]  ;;  %v177_v0 = vld [vmem:[%s746_s7] sm:$0x3]  ;;  %v375_v7 = vld [vmem:[%s746_s7 + $0x2] sm:$0x3] }
  0x2c   : > { %s181_s9 = sld [smem:[#allocation4]]  ;;  %v189_v4 = vld [vmem:[%s746_s7] sm:$0x3]  ;;  %v381_v19 = vld [vmem:[%s746_s7 + $0x2] sm:$0x3]  ;;  %s765_s25 = scalar_lea.vmem [#allocation9], %s371_s30 }
  0x2d   : > { %s184_s14 = sld [smem:[#allocation5]]  ;;  %v208_v15 = vld [vmem:[%s746_s7] sm:$0x3]  ;;  %v383_v23 = vld [vmem:[%s746_s7 + $0x4] sm:$0x3] }
  0x2e   : > { %s373_s15 = sld [smem:[#allocation3 + $0x4]]  ;;  %v232_v29 = vld [vmem:[%s746_s7] sm:$0x3]  ;;  %v389_v34 = vld [vmem:[%s746_s7 + $0x2] sm:$0x3] }
  0x2f   : > { %s374_s16 = sld [smem:[#allocation4 + $0x1]]  ;;  %v391_v37 = vld [vmem:[%s746_s7 + $0x4] sm:$0x3]  ;;  %v393_v40 = vld [vmem:[%s746_s7 + $0x6] sm:$0x3]  ;;  %s275_s7 = sshll.u32 %s765_s25, 4  ;;  %s276_s7 = int_to_ptr.vmem [resolvable:$true] %s275_s7 }
  0x30   : > { %s376_s17 = sld [smem:[#allocation3 + $0x5]] }
  0x31   : > { %v179_v1 = vstv %s178_s8  ;;  %s754_s18 = sld [smem:[#allocation5 + $0x1]] }
  0x32   : > { %v180_v2 = vmul.f32 %v179_v1, %v177_v0  ;;  %v182_v3 = vstv %s181_s9  ;;  %s379_s19 = sld [smem:[#allocation3 + $0x8]] }
  0x33   : > { %s380_s10 = sld [smem:[#allocation4 + $0x2]]  ;;  %v186_v8 = vstv %s184_s14  ;;  %s403_s14 = sshll.u32 %s615_s28, 3 }
  0x34   : > { %v183_v5 = vadd.f32 %v182_v3, %v180_v2  ;;  %v191_v6 = vstv %s373_s15  ;;  %s382_s20 = sld [smem:[#allocation3 + $0x9]]  ;;  %s262_s28 = scalar_lea.sflag [#allocation8], %s740_s26 }
  0x35   : > { %v192_v9 = vmul.f32 %v191_v6, %v189_v4  ;;  %v194_v10 = vstv %s374_s16  ;;  %s384_s21 = sld [smem:[#allocation3 + $0xa]] }
  0x36   : > { %v185_v11 = vmul.f32 %v183_v5, %v183_v5  ;;  %v199_v12 = vstv %s376_s17  ;;  %s758_s22 = sld [smem:[#allocation5 + $0x2]]  ;;  %s274_s17 = scalar_lea.hbm %s820_s4, %s403_s14 }
  0x37   : > { %v195_v13 = vadd.f32 %v194_v10, %v192_v9  ;;  %v200_v14 = vmul.f32 %v375_v7, %v199_v12  ;;  %s387_s23 = sld [smem:[#allocation3 + $0xc]]  ;;  %v204_v20 = vstv %s754_s18  ;;  %s277_s18 = sshll.u32 %s274_s17, 4  ;;  %s278_s18 = int_to_ptr.hbm [resolvable:$true] %s277_s18 }
  0x38   : > { %v187_v16 = vsub.f32 %v186_v8, %v185_v11  ;;  %v210_v18 = vstv %s379_s19  ;;  %s761_s24 = sld [smem:[#allocation4 + $0x3]]  ;;  %s553_s19 = sshra.s32 %s278_s18, 4  ;;  %s554_s19 = int_to_ptr.hbm [resolvable:$true] %s553_s19 }
  0x39   : > { %v201_v17 = vadd.f32 %v200_v14, %v195_v13  ;;  %v211_v21 = vmul.f32 %v210_v18, %v208_v15  ;;  %v213_v22 = vstv %s380_s10  ;;  %s390_s5 = sld [smem:[#allocation3 + $0xd]]  ;;  %s555_s10 = scalar_lea.hbm %s554_s19, 8 }
  0x3a   : > { %188 = vst [vmem:[%s765_s25] sm:$0x3] %v187_v16  ;;  %v217_v25 = vstv %s382_s20  ;;  %s392_s8 = sld [smem:[#allocation3 + $0xe]]  ;;  %p556_p4 = scmp.ne.s32.totalorder %s554_s19, %s555_s10 }
  0x3b   : > { %v203_v24 = vmul.f32 %v201_v17, %v201_v17  ;;  %v214_v26 = vadd.f32 %v213_v22, %v211_v21  ;;  %v218_v27 = vmul.f32 %v381_v19, %v217_v25  ;;  %v223_v28 = vstv %s384_s21  ;;  %s394_s30 = sld [smem:[#allocation3 + $0xf]]  ;;  %p560_p7 = scmp.lt.s32.totalorder %s554_s19, %s820_s4 }
  0x3c   : > { %v224_v31 = vmul.f32 %v383_v23, %v223_v28  ;;  %s395_s9 = sld [smem:[#allocation5 + $0x3]]  ;;  %v228_v41 = vstv %s758_s22  ;;  %p557_p5 = pnand %p556_p4, %p717_p9 }
  0x3d   : > { %v205_v30 = vsub.f32 %v204_v20, %v203_v24  ;;  %v219_v32 = vadd.f32 %v218_v27, %v214_v26  ;;  %v234_v33 = vstv %s387_s23  ;;  %s559_s22 = scalar_lea.hbm %s820_s4, 16 }
  0x3e   : > { %v235_v35 = vmul.f32 %v234_v33, %v232_v29  ;;  %v237_v36 = vstv %s761_s24  ;;  %p558_p6 = pneg %p557_p5  ;;  %p561_p8 = scmp.lt.s32.totalorder %s559_s22, %s555_s10 }
  0x3f   : > { %378 = vst [vmem:[%s765_s25 + $0x2] sm:$0x3] %v205_v30  ;;  %v225_v38 = vadd.f32 %v224_v31, %v219_v32  ;;  %v241_v39 = vstv %s390_s5 }
  0x40   : > { %v238_v42 = vadd.f32 %v237_v36, %v235_v35  ;;  %v242_v43 = vmul.f32 %v389_v34, %v241_v39  ;;  %v246_v44 = vstv %s392_s8  ;;  %p562_p10 = por %p561_p8, %p560_p7 }
  0x41   : > { %v227_v45 = vmul.f32 %v225_v38, %v225_v38  ;;  %v247_v46 = vmul.f32 %v391_v37, %v246_v44  ;;  %v252_v47 = vstv %s394_s30 }
  0x42   : > { %v243_v48 = vadd.f32 %v242_v43, %v238_v42  ;;  %v253_v49 = vmul.f32 %v393_v40, %v252_v47  ;;  %v257_v53 = vstv %s395_s9  ;;  %p563_p13 = pnand %p562_p10, %p558_p6 }
  0x43   : > { %v229_v50 = vsub.f32 %v228_v41, %v227_v45 }
  0x44   : > { %v248_v51 = vadd.f32 %v247_v46, %v243_v48 }
  0x45   : > { %386 = vst [vmem:[%s765_s25 + $0x4] sm:$0x3] %v229_v50 }
  0x46   : > { %v254_v52 = vadd.f32 %v253_v49, %v248_v51 }
  0x48   : > { %v256_v54 = vmul.f32 %v254_v52, %v254_v52 }
  0x4a   : > { %v258_v55 = vsub.f32 %v257_v53, %v256_v54 }
  0x4c   : > { %396 = vst [vmem:[%s765_s25 + $0x6] sm:$0x3] %v258_v55 }
  0x4d   : > { %566 = shalt.err (!%p563_p13)
}
  0x4e   : > { %s630_s26 = smov 32   ;;  %s631_s25 = smov 2  }
  0x4f   : > { %406 = dma.vmem_to_hbm [thread:$0]  (%p717_p9), %s276_s7, 128, %s278_s18, %s262_s28, %s630_s26, %s630_s26, %s631_s25  }
  0x50 PF: > { %s292_s5 = sand.u32 1, %s603_s0   ;;  %p413_p0 = pnand %p366_p12, %p724_p11 }
  0x51   : > { %s293_s8 = scalar_lea.sflag [#allocation8], %s292_s5 }
  0x52   : > { %p414_p1 = pneg %p413_p0 }
  0x54   : > { %598 = dma.done.wait (%p414_p1), %s293_s8, 128  }
  0x55   : > { %600 = vsyncadd (%p414_p1), %s293_s8, 4294967168  ;;  %s38_s2 = sadd.s32 1, %s623_s2   ;;  %s827_s0 = smov %s607_s1 }
  0x56   : > { %p35_p2 = scmp.ge.s32.totalorder %s38_s2, 4   ;;  %s828_s1 = smov %s611_s27 }
  0x57   : > { %s829_s27 = smov %s722_s12  ;;  %s830_s28 = smov %s619_s29 }
  0x58   : > { %s831_s29 = smov %s833_s6  ;;  %37 = sbr.rel (!%p35_p2) target bundleno = 15 (0xf), region = 75 }
  0x5d   :  { %299 = vsyncpa [#allocation7], 1 }
  0x5e   :  { %301 = vsyncpa [#allocation7 + $0x1], 1 }
  0x5f   :  { %302 = vsyncpa [#allocation8], 1 }
  0x60   :  { %304 = vsyncpa [#allocation8 + $0x1], 1 }

</bundles_post_ra>
